<compile_context>
chip_gen: v7x
topology: tpu7x:2x2x1
jax: 0.10.0
libtpu: 0.0.40
codegen_flags: <defaults>
</compile_context>

<pallas_src>
import jax
import jax.numpy as jnp
from jax.experimental import pallas as pl
from jax.experimental.pallas import tpu as pltpu

_LANE = 128


def _cdiv(a, m):
    return -(-a // m)


def _round_up(a, m):
    return _cdiv(a, m) * m


def _choose_tiling(B, n_in, tile_cap=32768):
    """Pick (tile_b, B_pad): near-equal 128-multiple tiles, even count >= 2
    when the batch is large enough (so v7x's two TensorCores both work), and a
    tile size bounded so the double-buffered x slab stays well under VMEM."""
    # bf16 x tile is sublane-padded to a multiple of 16 rows; keep the
    # double-buffered x footprint <= ~8 MiB.
    rows = _round_up(max(n_in, 1), 16)
    budget = 8 * 1024 * 1024
    cap = (budget // (2 * rows * 2)) // _LANE * _LANE
    cap = max(_LANE, min(tile_cap, cap))

    B_lane = _round_up(max(B, 1), _LANE)
    if B_lane <= _LANE:
        return _LANE, _LANE

    n = max(_cdiv(B_lane, cap), 2)     # at least 2 grid steps
    if n % 2:
        n += 1                         # even split across v7x's 2 TCs
    tile_b = _round_up(_cdiv(B_lane, n), _LANE)
    return tile_b, tile_b * n


def critic_kernel(x_ref, w1_ref, b1_ref, w2_ref, b2_ref, w3_ref, b3_ref, out_ref):
    # x_ref: (n_in, TILE_B) bf16 -- batch on the lane axis.
    xT = x_ref[...]
    # fc1: (10, n_in) @ (n_in, TILE_B) -> (10, TILE_B), f32 accumulation.
    h1 = jnp.dot(w1_ref[...], xT, preferred_element_type=jnp.float32)
    h1 = jnp.maximum(h1 + b1_ref[...], 0.0)                        # (10, TILE_B) f32
    # fc2 fully in f32 (no h1->bf16 cast: same MXU passes at K=10, better numerics).
    h2 = jnp.dot(w2_ref[...], h1, preferred_element_type=jnp.float32)
    h2 = jnp.maximum(h2 + b2_ref[...], 0.0)                        # (10, TILE_B) f32
    # state_value 10->1: VPU multiply + sublane reduction (avoid degenerate MXU).
    v = jnp.sum(h2 * w3_ref[...], axis=0, keepdims=True) + b3_ref[...]  # (1, TILE_B)
    out_ref[...] = v.astype(out_ref.dtype)


def critic_forward(x, params, *, tile_cap=32768, x_is_transposed=False):
    """x: (B, n_in) float32 (PyTorch layout), or (n_in, B) if x_is_transposed.
    params: PyTorch-layout weights/biases. Returns (B, 1) float32."""
    if x_is_transposed:
        n_in, B = x.shape
    else:
        B, n_in = x.shape

    tile_b, B_pad = _choose_tiling(B, n_in, tile_cap)
    num_tiles = B_pad // tile_b

    # Present x as a lane-dense (n_in, B_pad) bf16 slab.  When the producer
    # already emits that layout (x_is_transposed=True) this is a no-op cast;
    # otherwise it is one fused transpose+cast pass, and padding is only added
    # when the batch does not already match the tiling.
    xT = (x if x_is_transposed else x.T).astype(jnp.bfloat16)
    if B_pad != B:
        xT = jnp.pad(xT, ((0, 0), (0, B_pad - B)))

    # PyTorch (out, in) weight layout used directly (W @ xT); biases as columns.
    w1 = params["fc1_w"].astype(jnp.bfloat16)              # (10, n_in) bf16
    b1 = params["fc1_b"].astype(jnp.float32)[:, None]      # (10, 1)
    w2 = params["fc2_w"].astype(jnp.float32)                # (10, 10)  f32
    b2 = params["fc2_b"].astype(jnp.float32)[:, None]      # (10, 1)
    w3 = params["sv_w"].astype(jnp.float32).T               # (10, 1)
    b3 = params["sv_b"].astype(jnp.float32).reshape(1, 1)   # (1, 1)

    def const_spec(a):
        return pl.BlockSpec(a.shape, lambda i: (0, 0))

    flops = int(2 * B_pad * (n_in * 10 + 10 * 10 + 10))
    bytes_accessed = int(xT.size * 2 + B_pad * 4
                         + w1.size * 2
                         + (b1.size + w2.size + b2.size + w3.size + b3.size) * 4)

    grid_spec = pltpu.PrefetchScalarGridSpec(
        num_scalar_prefetch=0,
        grid=(num_tiles,),
        in_specs=[
            pl.BlockSpec((n_in, tile_b), lambda i: (0, i)),   # x tile, pipelined
            const_spec(w1), const_spec(b1),
            const_spec(w2), const_spec(b2),
            const_spec(w3), const_spec(b3),
        ],
        out_specs=pl.BlockSpec((1, tile_b), lambda i: (0, i)),  # lane-dense output
    )

    out = pl.pallas_call(
        critic_kernel,
        out_shape=jax.ShapeDtypeStruct((1, B_pad), jnp.float32),
        grid_spec=grid_spec,
        compiler_params=pltpu.CompilerParams(
            dimension_semantics=("parallel",),
            vmem_limit_bytes=32 * 1024 * 1024),
        cost_estimate=pl.CostEstimate(
            flops=flops, transcendentals=0, bytes_accessed=bytes_accessed),
    )(xT, w1, b1, w2, b2, w3, b3)

    # (1, B_pad) lane-dense slab -> (B, 1) PyTorch-shaped value.
    return out[0, :B][:, None]


def init_params(key, n_in):
    """Deterministic synthetic parameters with PyTorch nn.Linear shapes."""
    ks = jax.random.split(key, 6)

    def lin(kw, kb, fan_in, fan_out):
        bound = 1.0 / jnp.sqrt(fan_in)
        w = jax.random.uniform(kw, (fan_out, fan_in), jnp.float32, -bound, bound)
        b = jax.random.uniform(kb, (fan_out,), jnp.float32, -bound, bound)
        return w, b

    fc1_w, fc1_b = lin(ks[0], ks[1], n_in, 10)
    fc2_w, fc2_b = lin(ks[2], ks[3], 10, 10)
    sv_w, sv_b = lin(ks[4], ks[5], 10, 1)
    return dict(fc1_w=fc1_w, fc1_b=fc1_b,
                fc2_w=fc2_w, fc2_b=fc2_b,
                sv_w=sv_w, sv_b=sv_b)


def critic_reference(x, p):
    h1 = jnp.maximum(x @ p["fc1_w"].T + p["fc1_b"], 0.0)
    h2 = jnp.maximum(h1 @ p["fc2_w"].T + p["fc2_b"], 0.0)
    return h2 @ p["sv_w"].T + p["sv_b"]


if __name__ == "__main__":
    key = jax.random.PRNGKey(0)
    k_x, k_p, k_x2 = jax.random.split(key, 3)
    batch, n_inputs = 2, 4
    params = init_params(k_p, n_inputs)

    # Small PyTorch-shaped example (single tile).
    x = jax.random.normal(k_x, (batch, n_inputs), jnp.float32)
    value = jax.block_until_ready(critic_forward(x, params))
    ref = critic_reference(x, params)
    assert value.shape == (batch, 1), value.shape
    # bf16 x/w1 (f32 accumulation and f32 fc2/fc3) => loosened tolerance.
    assert jnp.allclose(value, ref, atol=5e-2, rtol=5e-2), (value, ref)

    # Ragged batch exercising the adaptive multi-tile grid + padding slice-off.
    x2 = jax.random.normal(k_x2, (300, n_inputs), jnp.float32)
    value2 = jax.block_until_ready(critic_forward(x2, params))
    ref2 = critic_reference(x2, params)
    assert value2.shape == (300, 1), value2.shape
    assert jnp.allclose(value2, ref2, atol=5e-2, rtol=5e-2)

    print("KERNEL_OK")
</pallas_src>

<mosaic_0001>
module attributes {stable_mosaic.version = 11 : i64} {
  func.func @critic_kernel(%arg0: i32, %arg1: memref<4x128xbf16, #tpu.memory_space<vmem>>, %arg2: memref<10x4xbf16, #tpu.memory_space<vmem>>, %arg3: memref<10x1xf32, #tpu.memory_space<vmem>>, %arg4: memref<10x10xf32, #tpu.memory_space<vmem>>, %arg5: memref<10x1xf32, #tpu.memory_space<vmem>>, %arg6: memref<10x1xf32, #tpu.memory_space<vmem>>, %arg7: memref<1x1xf32, #tpu.memory_space<vmem>>, %arg8: memref<1x128xf32, #tpu.memory_space<vmem>>) attributes {dimension_semantics = [#tpu.dimension_semantics<parallel>], iteration_bounds = array<i64: 1>, scalar_prefetch = 0 : i64, scratch_operands = 0 : i64, tpu.core_type = #tpu.core_type<tc>, window_params = [{transform_indices = @transform_0, window_bounds = array<i64: 4, 128>}, {pipeline_mode = #tpu.pipeline_mode<synchronous>, transform_indices = @transform_1, window_bounds = array<i64: 10, 4>}, {pipeline_mode = #tpu.pipeline_mode<synchronous>, transform_indices = @transform_2, window_bounds = array<i64: 10, 1>}, {pipeline_mode = #tpu.pipeline_mode<synchronous>, transform_indices = @transform_3, window_bounds = array<i64: 10, 10>}, {pipeline_mode = #tpu.pipeline_mode<synchronous>, transform_indices = @transform_4, window_bounds = array<i64: 10, 1>}, {pipeline_mode = #tpu.pipeline_mode<synchronous>, transform_indices = @transform_5, window_bounds = array<i64: 10, 1>}, {pipeline_mode = #tpu.pipeline_mode<synchronous>, transform_indices = @transform_6, window_bounds = array<i64: 1, 1>}, {transform_indices = @transform_7, window_bounds = array<i64: 1, 128>}]} {
    %c0 = arith.constant 0 : index
    %c0_0 = arith.constant 0 : index
    %0 = vector.load %arg1[%c0, %c0_0] : memref<4x128xbf16, #tpu.memory_space<vmem>>, vector<4x128xbf16>
    %c0_1 = arith.constant 0 : index
    %c0_2 = arith.constant 0 : index
    %1 = vector.load %arg2[%c0_1, %c0_2] : memref<10x4xbf16, #tpu.memory_space<vmem>>, vector<10x4xbf16>
    %cst = arith.constant dense<0.000000e+00> : vector<10x128xf32>
    %2 = tpu.matmul %1, %0, %cst {dimension_numbers = #tpu.dot_dimension_numbers<[1], [0], [0], [1], [0, 0, 1, 1], [], []>} : vector<10x4xbf16>, vector<4x128xbf16>, vector<10x128xf32> -> vector<10x128xf32>
    %c0_3 = arith.constant 0 : index
    %c0_4 = arith.constant 0 : index
    %3 = vector.load %arg3[%c0_3, %c0_4] : memref<10x1xf32, #tpu.memory_space<vmem>>, vector<10x1xf32>
    %4 = vector.broadcast %3 : vector<10x1xf32> to vector<10x128xf32>
    %5 = arith.addf %2, %4 : vector<10x128xf32>
    %cst_5 = arith.constant 0.000000e+00 : f32
    %6 = vector.broadcast %cst_5 : f32 to vector<10x128xf32>
    %7 = arith.maximumf %5, %6 : vector<10x128xf32>
    %c0_6 = arith.constant 0 : index
    %c0_7 = arith.constant 0 : index
    %8 = vector.load %arg4[%c0_6, %c0_7] : memref<10x10xf32, #tpu.memory_space<vmem>>, vector<10x10xf32>
    %cst_8 = arith.constant dense<0.000000e+00> : vector<10x128xf32>
    %9 = tpu.matmul %8, %7, %cst_8 {dimension_numbers = #tpu.dot_dimension_numbers<[1], [0], [0], [1], [0, 0, 1, 1], [], []>} : vector<10x10xf32>, vector<10x128xf32>, vector<10x128xf32> -> vector<10x128xf32>
    %c0_9 = arith.constant 0 : index
    %c0_10 = arith.constant 0 : index
    %10 = vector.load %arg5[%c0_9, %c0_10] : memref<10x1xf32, #tpu.memory_space<vmem>>, vector<10x1xf32>
    %11 = vector.broadcast %10 : vector<10x1xf32> to vector<10x128xf32>
    %12 = arith.addf %9, %11 : vector<10x128xf32>
    %cst_11 = arith.constant 0.000000e+00 : f32
    %13 = vector.broadcast %cst_11 : f32 to vector<10x128xf32>
    %14 = arith.maximumf %12, %13 : vector<10x128xf32>
    %c0_12 = arith.constant 0 : index
    %c0_13 = arith.constant 0 : index
    %15 = vector.load %arg6[%c0_12, %c0_13] : memref<10x1xf32, #tpu.memory_space<vmem>>, vector<10x1xf32>
    %16 = vector.broadcast %15 : vector<10x1xf32> to vector<10x128xf32>
    %17 = arith.mulf %14, %16 : vector<10x128xf32>
    %cst_14 = arith.constant dense<0.000000e+00> : vector<128xf32>
    %18 = vector.multi_reduction <add>, %17, %cst_14 [0] : vector<10x128xf32> to vector<128xf32>
    %19 = vector.shape_cast %18 : vector<128xf32> to vector<1x128xf32>
    %c0_15 = arith.constant 0 : index
    %c0_16 = arith.constant 0 : index
    %20 = vector.load %arg7[%c0_15, %c0_16] : memref<1x1xf32, #tpu.memory_space<vmem>>, vector<1x1xf32>
    %21 = vector.broadcast %20 : vector<1x1xf32> to vector<1x128xf32>
    %22 = arith.addf %19, %21 : vector<1x128xf32>
    %c0_17 = arith.constant 0 : index
    %c0_18 = arith.constant 0 : index
    %23 = vector.load %arg8[%c0_17, %c0_18] : memref<1x128xf32, #tpu.memory_space<vmem>>, vector<1x128xf32>
    tpu.vector_store %arg8[%c0_17, %c0_18], %22 {strides = array<i32>} : memref<1x128xf32, #tpu.memory_space<vmem>>, vector<1x128xf32>,
    return
  }
  func.func @transform_0(%arg0: i32) -> (i32, i32) {
    %c0_i32 = arith.constant 0 : i32
    %c0_i32_0 = arith.constant 0 : i32
    return %c0_i32, %arg0 : i32, i32
  }
  func.func @transform_1(%arg0: i32) -> (i32, i32) {
    %c0_i32 = arith.constant 0 : i32
    %c0_i32_0 = arith.constant 0 : i32
    %c0_i32_1 = arith.constant 0 : i32
    return %c0_i32, %c0_i32_0 : i32, i32
  }
  func.func @transform_2(%arg0: i32) -> (i32, i32) {
    %c0_i32 = arith.constant 0 : i32
    %c0_i32_0 = arith.constant 0 : i32
    %c0_i32_1 = arith.constant 0 : i32
    return %c0_i32, %c0_i32_0 : i32, i32
  }
  func.func @transform_3(%arg0: i32) -> (i32, i32) {
    %c0_i32 = arith.constant 0 : i32
    %c0_i32_0 = arith.constant 0 : i32
    %c0_i32_1 = arith.constant 0 : i32
    return %c0_i32, %c0_i32_0 : i32, i32
  }
  func.func @transform_4(%arg0: i32) -> (i32, i32) {
    %c0_i32 = arith.constant 0 : i32
    %c0_i32_0 = arith.constant 0 : i32
    %c0_i32_1 = arith.constant 0 : i32
    return %c0_i32, %c0_i32_0 : i32, i32
  }
  func.func @transform_5(%arg0: i32) -> (i32, i32) {
    %c0_i32 = arith.constant 0 : i32
    %c0_i32_0 = arith.constant 0 : i32
    %c0_i32_1 = arith.constant 0 : i32
    return %c0_i32, %c0_i32_0 : i32, i32
  }
  func.func @transform_6(%arg0: i32) -> (i32, i32) {
    %c0_i32 = arith.constant 0 : i32
    %c0_i32_0 = arith.constant 0 : i32
    %c0_i32_1 = arith.constant 0 : i32
    return %c0_i32, %c0_i32_0 : i32, i32
  }
  func.func @transform_7(%arg0: i32) -> (i32, i32) {
    %c0_i32 = arith.constant 0 : i32
    %c0_i32_0 = arith.constant 0 : i32
    return %c0_i32, %arg0 : i32, i32
  }
}

</mosaic_0001>

<bundles_post_ra>
// kernel: tpu_custom_call.1
= control target key start
LH: loop header
LB: loop body
LE: loop exit
PB: predicated region body
PF: predicated region fallthrough
CT: control target
= control target key end

     0   :  { %s407_s0 = inlined_call_operand.vmem [shape: bf16[4,128], index: 0, kind: input, shape index: {}]   ;;  %s408_s1 = inlined_call_operand.vmem [shape: bf16[10,4], index: 1, kind: input, shape index: {}]   ;;  %s409_s2 = inlined_call_operand.vmem [shape: f32[10,1], index: 2, kind: input, shape index: {}]   ;;  %s410_s3 = inlined_call_operand.vmem [shape: f32[10,10], index: 3, kind: input, shape index: {}]   ;;  %s411_s4 = inlined_call_operand.vmem [shape: f32[10,1], index: 4, kind: input, shape index: {}]   ;;  %s412_s5 = inlined_call_operand.vmem [shape: f32[10,1], index: 5, kind: input, shape index: {}]   ;;  %s413_s6 = inlined_call_operand.<no memory space> [shape: f32[1,1], index: 6, kind: input, shape index: {}]   ;;  %s414_s7 = inlined_call_operand.hbm [shape: f32[1,128], index: 7, kind: output, shape index: {}]  }
   0x1   :  { %v12_v0 = vstv %s413_s6 }
   0x2   :  { %13 = vst [vmem:[#allocation2] sm:$0x1] %v12_v0 }
   0x3   :  { %v30_v1 = vld [vmem:[%s407_s0] sm:$0x3]  ;;  %vm54_vm0 = vcmask 1041408   ;;  %v312_v2 = vmov 0.0   ;;  %vm313_vm1 = vmmov 0   ;;  %vm50_vm2 = vcmask 31744  }
   0x4   :  { %261 = vmatprep.subr.bf16.mxu0 %v312_v2  ;;  %v56_v3 = vsel %vm54_vm0, %v30_v1, 0  ;;  %263 = vmatprep.mubr.msk.bf16.mxu0 %vm313_vm1, %v312_v2  ;;  %v287_v4 = vld [vmem:[%s408_s1] sm:$0x1f]   ;;  %v314_v5 = vmov 0  }
   0x5   :  { %262 = vmatpush3.bf16.msra.mxu0 %v56_v3  ;;  %285 = vset.pattern.permute.xlu0 %v314_v5  ;;  %v33_v6 = vld [vmem:[%s409_s2] sm:$0xff] }
   0x6   :  { %37 = vperm.xlu0 %285, %v33_v6   ;;  %286 = vset.pattern.permute.xlu1 %v314_v5 }
   0x7   :  { %14 = vsyncpa [#allocation4], 0  ;;  %v34_v7 = vld [vmem:[%s409_s2 + $0x8] sm:$0x3]  ;;  %v101_v10 = vld [vmem:[%s410_s3] sm:$0xff]  ;;  %vm115_vm3 = vcmask 80896   ;;  %v230_v39 = vlaneseq }
   0x8   :  { %264 = vmatmul.mubr.msk.bf16.vlgmr.msra.gmra.mrb[0].mxu0 %vm50_vm2, %v287_v4  ;;  %v203_v8 = vld [vmem:[%s412_s5 + $0x8] sm:$0x3]  ;;  %271 = vmatprep.mubr.msk.f32.mxu1 %vm115_vm3, %v101_v10  ;;  %v103_v12 = vld [vmem:[%s411_s4] sm:$0xff]  ;;  %vm315_vm4 = vmmov 1  }
   0x9   :  { %v224_v9 = vld [vmem:[#allocation2] sm:$0x1]  ;;  %v104_v11 = vld [vmem:[%s411_s4 + $0x8] sm:$0x3]  ;;  %vm275_vm5 = vmpackc.low %vm54_vm0, %vm315_vm4  ;;  %v231_v42 = vshrl.u32 %v230_v39, 7 }
   0xa   :  { %42 = vperm.xlu0 %285, %v34_v7   ;;  %112 = vperm.xlu1 %286, %v104_v11   ;;  %v202_v13 = vld [vmem:[%s412_s5] sm:$0xff]  ;;  %v102_v25 = vld [vmem:[%s410_s3 + $0x8] sm:$0x3]  ;;  %s316_s3 = smov [#allocation3]  }
   0xb   :  { %v232_v45 = vsub.s32 0, %v231_v42  ;;  %s242_s5 = sshll.u32 %s316_s3, 4  ;;  %s243_s5 = int_to_ptr.vmem [resolvable:$true] %s242_s5 }
   0xc   :  { %s288_s18 = scalar_lea.vmem %s243_s5, 16  ;;  %s292_s19 = scalar_lea.vmem %s243_s5, 32 }
   0xd   :  { %p289_p0 = scmp.ne.s32.totalorder %s243_s5, %s288_s18  ;;  %p293_p1 = scmp.lt.s32.totalorder %s243_s5, %s243_s5 }
   0xe   :  { %211 = vperm.xlu0 %285, %v203_v8   ;;  %107 = vperm.xlu1 %286, %v103_v12   ;;  %p294_p2 = scmp.lt.s32.totalorder %s292_s19, %s288_s18 }
  0x10   :  { %p295_p3 = por %p294_p2, %p293_p1 }
  0x12   :  { %227 = vperm.xlu0 %285, %v224_v9   ;;  %206 = vperm.xlu1 %286, %v202_v13   ;;  %p296_p4 = pnand %p295_p3, %p289_p0 }
  0x85   :  { %v38_v14 = vpop.permute.xlu0 %37 }
  0x89   :  { %v43_v18 = vpop.permute.xlu0 %42  ;;  %v113_v26 = vpop.permute.xlu1 %112 }
  0x8d   :  { %v108_v27 = vpop.permute.xlu1 %107  ;;  %v212_v33 = vpop.permute.xlu0 %211 }
  0x91   :  { %v207_v35 = vpop.permute.xlu1 %206  ;;  %v228_v47 = vpop.permute.xlu0 %227 }
  0x92   :  { %v233_v49 = vrot.slane %v228_v47, %v232_v45 }
  0xdb   :  { %v92_v15 = vpop.f32.mrb[0].mxu0 }
  0xdc   :  { %v93_v16 = vadd.f32 %v92_v15, %v38_v14  ;;  %v265_v17 = vpop.f32.mrb[1].mxu0 }
  0xdd   :  { %v95_v19 = vpop.f32.mrb[2].mxu0 }
  0xde   :  { %v96_v20 = vadd.f32 %v95_v19, %v43_v18  ;;  %v266_v21 = vpop.f32.mrb[3].mxu0  ;;  %v99_v22 = vmax.f32 %v93_v16, 0.0 }
  0xe0   :  { %v100_v23 = vmax.f32 %v96_v20, 0.0 }
  0xe2   :  { %v274_v24 = vpack.c.bf16 %v100_v23, %v99_v22 }
  0xe4   :  { %276 = vmatprep.subr.msk.bf16.mxu1 %vm275_vm5, %v274_v24 }
  0xe5   :  { %279 = vmatpush3.bf16.msk.msra.mxu1 %vm275_vm5, %v274_v24 }
  0xe8   :  { %272 = vmatmul.mubr.msk.f32.vlgmr.msra.gmra.mrb[0].mxu1 %vm115_vm3, %v102_v25 }
 0x1bb   :  { %v273_v28 = vpop.f32.mrb[0].mxu1 }
 0x1bc   :  { %v197_v29 = vadd.f32 %v273_v28, %v113_v26  ;;  %v191_v30 = vpop.f32.mrb[1].mxu1 }
 0x1bd   :  { %v192_v31 = vadd.f32 %v191_v30, %v108_v27 }
 0x1be   :  { %v201_v32 = vmax.f32 %v197_v29, 0.0 }
 0x1bf   :  { %v200_v34 = vmax.f32 %v192_v31, 0.0 }
 0x1c0   :  { %v215_v36 = vmul.f32 %v212_v33, %v201_v32 }
 0x1c1   :  { %v214_v37 = vmul.f32 %v207_v35, %v200_v34 }
 0x1c2   :  { %v216_v38 = vsel %vm54_vm0, %v215_v36, 0.0 }
 0x1c3   :  { %v217_v40 = vadd.f32 %v216_v38, %v214_v37 }
 0x1c5   :  { %v218_v41 = vrot.slane %v217_v40, 4 }
 0x1c7   :  { %v219_v43 = vadd.f32 %v218_v41, %v217_v40 }
 0x1c9   :  { %v220_v44 = vrot.slane %v219_v43, 2 }
 0x1cb   :  { %v221_v46 = vadd.f32 %v220_v44, %v219_v43 }
 0x1cd   :  { %v222_v48 = vrot.slane %v221_v46, 1 }
 0x1cf   :  { %v223_v50 = vadd.f32 %v222_v48, %v221_v46 }
 0x1d1   :  { %v234_v51 = vadd.f32 %v233_v49, %v223_v50 }
 0x1d3   :  { %235 = vst [vmem:[#allocation3] sm:$0x1] %v234_v51 }
 0x1d4   :  { %299 = shalt.err (!%p296_p4)
}
 0x1d5   :  { %s300_s22 = scalar_lea.hbm %s414_s7, 16 }
 0x1d6   :  { %p301_p5 = scmp.ne.s32.totalorder %s414_s7, %s300_s22  ;;  %p304_p6 = scmp.lt.u32.totalorder %s300_s22, %s414_s7 }
 0x1d8   :  { %p306_p7 = pnand %p304_p6, %p301_p5 }
 0x1da   :  { %309 = shalt.err (!%p306_p7)
}
 0x1db   :  { %245 = dma.vmem_to_hbm [thread:$0]  %s243_s5, 16, %s414_s7, [#allocation4]  }
 0x1dc   :  { %310 = dma.done.wait [#allocation4], 16  }
 0x1dd   :  { %311 = vsyncadd [#allocation4], 4294967280 }
 0x1de   :  { %249 = vsyncpa [#allocation4], 1 }

</bundles_post_ra>
